<compile_context>
chip_gen: v5e
topology: v5e:2x2
jax: 0.10.0
libtpu: 0.0.40
codegen_flags: <defaults>
</compile_context>

<pallas_src>
from functools import partial

import jax
import jax.numpy as jnp
import numpy as np
from jax.experimental import pallas as pl
from jax.experimental.pallas import tpu as pltpu


# ----------------------------- Pallas kernel -------------------------------
def _projector_kernel(xt_ref, w1t_ref, b1t_ref, w2ct_ref, e2t_ref, idx_ref):
    # xt_ref:   (P, nt)   token tile: features on sublanes, tokens on lanes
    # w1t_ref:  (Hd, P)   patch-embed weight, transposed
    # b1t_ref:  (Hd, 1)
    # w2ct_ref: (K, Hd)   fused (-2 * codebook) @ w2^T
    # e2t_ref:  (K, 1)    ||e_k||^2 + (-2 * codebook) @ b2^T
    # idx_ref:  (1, 1, nt) int32 nearest-codebook indices (lane-dense)
    x = xt_ref[...]

    # encoder hot path: patch embedding + GELU (standard MXU feed, f32 acc)
    h = jnp.dot(w1t_ref[...], x, preferred_element_type=jnp.float32)
    h = jax.nn.gelu(h + b1t_ref[...])                       # (Hd, nt), f32

    # VQ distances (w2/b2 folded into the codebook matmul in prepare_params):
    #   argmin_k ||z - e_k||^2 == argmin_k (-2 z.e_k + ||e_k||^2)
    d = jnp.dot(w2ct_ref[...], h.astype(w2ct_ref.dtype),
                preferred_element_type=jnp.float32) + e2t_ref[...]   # (K, nt)

    # Reduce over the codebook (sublane) axis -> lane-dense (1, nt) indices.
    min_d = jnp.min(d, axis=0, keepdims=True)               # (1, nt)
    ids = jax.lax.broadcasted_iota(jnp.int32, d.shape, 0)
    big = jnp.int32(np.iinfo(np.int32).max)
    # first-match tie-break (matches torch.argmin semantics)
    idx = jnp.min(jnp.where(d <= min_d, ids, big), axis=0, keepdims=True)
    idx_ref[...] = idx[None].astype(jnp.int32)              # (1, 1, nt)


# ------------------------- one-time parameter prep --------------------------
def _round_up(x, m):
    return (x + m - 1) // m * m


def _cdiv(a, b):
    return -(-a // b)


def prepare_params(params, mxu_dtype=jnp.float32):
    """Hoisted, call-once precompute (transposes, w2/b2 fusion, ||e||^2).

    mxu_dtype=jnp.bfloat16 halves streamed bytes / MXU passes (v6e/v7x lever);
    accumulation and GELU/argmin math stay f32 inside the kernel.
    """
    w1, b1, w2, b2, codebook = params
    f32 = jnp.float32
    w1 = jnp.asarray(w1, f32)
    b1 = jnp.asarray(b1, f32)
    w2 = jnp.asarray(w2, f32)
    b2 = jnp.asarray(b2, f32)
    cb = jnp.asarray(codebook, f32)

    w1t = w1.T.astype(mxu_dtype)                            # (Hd, P)
    b1t = b1.reshape(-1, 1)                                 # (Hd, 1)
    w2ct = ((-2.0 * cb) @ w2.T).astype(mxu_dtype)           # (K, Hd)
    e2t = (jnp.sum(cb * cb, axis=1, keepdims=True)
           + (-2.0 * cb) @ b2.reshape(-1, 1))               # (K, 1)
    return (w1t, b1t, w2ct, e2t)


# ------------------------------- wrapper ------------------------------------
@partial(jax.jit, static_argnames=("patch", "token_tile"))
def vqvae_projector(image, prepared, *, patch=4, token_tile=1024):
    """image: (B, C, H, W) float32 (NCHW, as in the PyTorch module)."""
    w1t, b1t, w2ct, e2t = prepared
    B, C, H, W = image.shape
    p = patch
    Hl, Wl = H // p, W // p
    N = B * Hl * Wl                     # number of latent tokens
    P = C * p * p                       # im2col patch dimension

    # --- glue: patchify, tokens on the LAST (lane) axis -> (P, N) -----------
    # TODO(synk): fuse this rearrange into the kernel (avoids one HBM pass of
    # the activations at realistic sizes); 5-D relayout in Mosaic is the blocker.
    xt = image.astype(w1t.dtype)
    xt = xt.reshape(B, C, Hl, p, Wl, p).transpose(1, 3, 5, 0, 2, 4).reshape(P, N)

    # Token axis padded only to a multiple of 128 (usually a no-op at real
    # sizes); tail-token results are garbage and sliced off below.
    N128 = _round_up(N, 128)
    if N128 != N:
        xt = jnp.pad(xt, ((0, 0), (0, N128 - N)))

    # Token tile: lane-dense multiple of 128, capped at ~half the tokens so
    # the grid has >= 2 steps whenever possible (v7x has 2 TensorCores).
    nt = max(128, min(_round_up(token_tile, 128), _round_up(_cdiv(N128, 2), 128)))
    G = _cdiv(N128, nt)

    out = pl.pallas_call(
        _projector_kernel,
        out_shape=jax.ShapeDtypeStruct((G, 1, nt), jnp.int32),
        grid_spec=pltpu.PrefetchScalarGridSpec(
            num_scalar_prefetch=0,
            grid=(G,),
            in_specs=[
                pl.BlockSpec((P, nt), lambda i: (0, i)),      # streamed tokens
                pl.BlockSpec(w1t.shape, lambda i: (0, 0)),    # w1^T (resident)
                pl.BlockSpec(b1t.shape, lambda i: (0, 0)),    # b1^T
                pl.BlockSpec(w2ct.shape, lambda i: (0, 0)),   # fused codebook
                pl.BlockSpec(e2t.shape, lambda i: (0, 0)),    # ||e||^2 (+b2 term)
            ],
            out_specs=pl.BlockSpec((1, 1, nt), lambda i: (i, 0, 0)),
        ),
        compiler_params=pltpu.CompilerParams(
            dimension_semantics=("parallel",)),
    )(xt, w1t, b1t, w2ct, e2t)

    # (G, 1, nt) -> flat tokens -> drop tail padding -> latent grid
    return out.reshape(G * nt)[:N].reshape(B, Hl, Wl)


# --------------------------- references (for testing) -----------------------
def _fused_reference(image, prepared, *, patch=4):
    """Pure-XLA mirror of the exact kernel math (same fusion / orientation)."""
    w1t, b1t, w2ct, e2t = prepared
    B, C, H, W = image.shape
    p = patch
    Hl, Wl = H // p, W // p
    P, N = C * p * p, B * Hl * Wl
    xt = image.astype(w1t.dtype)
    xt = xt.reshape(B, C, Hl, p, Wl, p).transpose(1, 3, 5, 0, 2, 4).reshape(P, N)
    h = jax.nn.gelu(jnp.dot(w1t, xt, preferred_element_type=jnp.float32) + b1t)
    d = jnp.dot(w2ct, h.astype(w2ct.dtype),
                preferred_element_type=jnp.float32) + e2t
    return jnp.argmin(d, axis=0).astype(jnp.int32).reshape(B, Hl, Wl)


def _exact_distances_f64(image, params, *, patch=4):
    """float64 numpy ||z - e_k||^2 with the module's original (unfused) math."""
    img = np.asarray(image, dtype=np.float64)
    w1, b1, w2, b2, cb = (np.asarray(a, dtype=np.float64) for a in params)
    B, C, H, W = img.shape
    p = patch
    Hl, Wl = H // p, W // p
    x = img.reshape(B, C, Hl, p, Wl, p).transpose(0, 2, 4, 1, 3, 5)
    x = x.reshape(B * Hl * Wl, C * p * p)
    a = x @ w1 + b1
    h = 0.5 * a * (1.0 + np.tanh(np.sqrt(2.0 / np.pi) * (a + 0.044715 * a ** 3)))
    z = h @ w2 + b2
    return ((z[:, None, :] - cb[None, :, :]) ** 2).sum(-1)   # (N, K)


if __name__ == "__main__":
    # Small, deterministic shapes consistent with the module's forward:
    # image (B=2, C=3, 16, 16), patch=4 -> latent grid 4x4, hidden=64,
    # codebook dim D=32, codebook size K=128.
    B, C, H, W = 2, 3, 16, 16
    patch, Hd, D, K = 4, 64, 32, 128
    P = C * patch * patch

    key = jax.random.PRNGKey(0)
    k_img, k_w1, k_b1, k_w2, k_b2, k_cb = jax.random.split(key, 6)

    image = jax.random.normal(k_img, (B, C, H, W), dtype=jnp.float32)
    params = (
        jax.random.normal(k_w1, (P, Hd), dtype=jnp.float32) * 0.1,
        jax.random.normal(k_b1, (1, Hd), dtype=jnp.float32) * 0.01,
        jax.random.normal(k_w2, (Hd, D), dtype=jnp.float32) * 0.1,
        jax.random.normal(k_b2, (1, D), dtype=jnp.float32) * 0.01,
        jax.random.normal(k_cb, (K, D), dtype=jnp.float32),   # codebook
    )

    # One-time parameter prep (hoisted out of the per-call jit).
    prepared = prepare_params(params)

    indices = vqvae_projector(image, prepared, patch=patch, token_tile=1024)
    jax.block_until_ready(indices)

    assert indices.shape == (B, H // patch, W // patch)
    assert indices.dtype == jnp.int32

    # 1) Pallas machinery check: exact agreement with the same math in XLA.
    ref = _fused_reference(image, prepared, patch=patch)
    assert np.array_equal(np.asarray(indices), np.asarray(ref))

    # 2) Module-semantics check: chosen codes are (near-)nearest under the
    #    true ||z - e||^2 metric in float64 (tolerates near-tie f32 rounding).
    d64 = _exact_distances_f64(image, params, patch=patch)
    flat = np.asarray(indices).reshape(-1)
    rows = np.arange(d64.shape[0])
    gap = d64[rows, flat] - d64.min(axis=1)
    assert gap.min() >= -1e-9 and gap.max() < 0.5, float(gap.max())

    print("KERNEL_OK")
</pallas_src>

<mosaic_0001>
module attributes {stable_mosaic.version = 11 : i64} {
  func.func @_projector_kernel(%arg0: i32, %arg1: memref<48x128xf32, #tpu.memory_space<vmem>>, %arg2: memref<64x48xf32, #tpu.memory_space<vmem>>, %arg3: memref<64x1xf32, #tpu.memory_space<vmem>>, %arg4: memref<128x64xf32, #tpu.memory_space<vmem>>, %arg5: memref<128x1xf32, #tpu.memory_space<vmem>>, %arg6: memref<1x1x128xi32, #tpu.memory_space<vmem>>) attributes {dimension_semantics = [#tpu.dimension_semantics<parallel>], iteration_bounds = array<i64: 1>, scalar_prefetch = 0 : i64, scratch_operands = 0 : i64, tpu.core_type = #tpu.core_type<tc>, window_params = [{transform_indices = @transform_0, window_bounds = array<i64: 48, 128>}, {pipeline_mode = #tpu.pipeline_mode<synchronous>, transform_indices = @transform_1, window_bounds = array<i64: 64, 48>}, {pipeline_mode = #tpu.pipeline_mode<synchronous>, transform_indices = @transform_2, window_bounds = array<i64: 64, 1>}, {pipeline_mode = #tpu.pipeline_mode<synchronous>, transform_indices = @transform_3, window_bounds = array<i64: 128, 64>}, {pipeline_mode = #tpu.pipeline_mode<synchronous>, transform_indices = @transform_4, window_bounds = array<i64: 128, 1>}, {transform_indices = @transform_5, window_bounds = array<i64: 1, 1, 128>}]} {
    %c0 = arith.constant 0 : index
    %c0_0 = arith.constant 0 : index
    %0 = vector.load %arg1[%c0, %c0_0] : memref<48x128xf32, #tpu.memory_space<vmem>>, vector<48x128xf32>
    %c0_1 = arith.constant 0 : index
    %c0_2 = arith.constant 0 : index
    %1 = vector.load %arg2[%c0_1, %c0_2] : memref<64x48xf32, #tpu.memory_space<vmem>>, vector<64x48xf32>
    %cst = arith.constant dense<0.000000e+00> : vector<64x128xf32>
    %2 = tpu.matmul %1, %0, %cst {dimension_numbers = #tpu.dot_dimension_numbers<[1], [0], [0], [1], [0, 0, 1, 1], [], []>} : vector<64x48xf32>, vector<48x128xf32>, vector<64x128xf32> -> vector<64x128xf32>
    %c0_3 = arith.constant 0 : index
    %c0_4 = arith.constant 0 : index
    %3 = vector.load %arg3[%c0_3, %c0_4] : memref<64x1xf32, #tpu.memory_space<vmem>>, vector<64x1xf32>
    %4 = vector.broadcast %3 : vector<64x1xf32> to vector<64x128xf32>
    %5 = arith.addf %2, %4 : vector<64x128xf32>
    %6 = arith.mulf %5, %5 : vector<64x128xf32>
    %7 = arith.mulf %5, %6 : vector<64x128xf32>
    %cst_5 = arith.constant 4.471500e-02 : f32
    %8 = vector.broadcast %cst_5 : f32 to vector<64x128xf32>
    %9 = arith.mulf %8, %7 : vector<64x128xf32>
    %10 = arith.addf %5, %9 : vector<64x128xf32>
    %cst_6 = arith.constant 0.797884583 : f32
    %11 = vector.broadcast %cst_6 : f32 to vector<64x128xf32>
    %12 = arith.mulf %11, %10 : vector<64x128xf32>
    %13 = math.tanh %12 : vector<64x128xf32>
    %cst_7 = arith.constant 1.000000e+00 : f32
    %14 = vector.broadcast %cst_7 : f32 to vector<64x128xf32>
    %15 = arith.addf %14, %13 : vector<64x128xf32>
    %cst_8 = arith.constant 5.000000e-01 : f32
    %16 = vector.broadcast %cst_8 : f32 to vector<64x128xf32>
    %17 = arith.mulf %16, %15 : vector<64x128xf32>
    %18 = arith.mulf %5, %17 : vector<64x128xf32>
    %c0_9 = arith.constant 0 : index
    %c0_10 = arith.constant 0 : index
    %19 = vector.load %arg4[%c0_9, %c0_10] : memref<128x64xf32, #tpu.memory_space<vmem>>, vector<128x64xf32>
    %cst_11 = arith.constant dense<0.000000e+00> : vector<128x128xf32>
    %20 = tpu.matmul %19, %18, %cst_11 {dimension_numbers = #tpu.dot_dimension_numbers<[1], [0], [0], [1], [0, 0, 1, 1], [], []>} : vector<128x64xf32>, vector<64x128xf32>, vector<128x128xf32> -> vector<128x128xf32>
    %c0_12 = arith.constant 0 : index
    %c0_13 = arith.constant 0 : index
    %21 = vector.load %arg5[%c0_12, %c0_13] : memref<128x1xf32, #tpu.memory_space<vmem>>, vector<128x1xf32>
    %22 = vector.broadcast %21 : vector<128x1xf32> to vector<128x128xf32>
    %23 = arith.addf %20, %22 : vector<128x128xf32>
    %cst_14 = arith.constant dense<0x7F800000> : vector<128xf32>
    %24 = vector.multi_reduction <minimumf>, %23, %cst_14 [0] : vector<128x128xf32> to vector<128xf32>
    %25 = vector.shape_cast %24 : vector<128xf32> to vector<1x128xf32>
    %26 = tpu.iota {dimensions = array<i32: 0>} : vector<128x128xi32>
    %27 = vector.broadcast %25 : vector<1x128xf32> to vector<128x128xf32>
    %28 = arith.cmpf ole, %23, %27 : vector<128x128xf32>
    %c2147483647_i32 = arith.constant 2147483647 : i32
    %29 = vector.broadcast %c2147483647_i32 : i32 to vector<128x128xi32>
    %30 = arith.select %28, %26, %29 : vector<128x128xi1>, vector<128x128xi32>
    %cst_15 = arith.constant dense<2147483647> : vector<128xi32>
    %31 = vector.multi_reduction <minsi>, %30, %cst_15 [0] : vector<128x128xi32> to vector<128xi32>
    %32 = vector.shape_cast %31 : vector<128xi32> to vector<1x128xi32>
    %33 = vector.shape_cast %32 : vector<1x128xi32> to vector<1x1x128xi32>
    %c0_16 = arith.constant 0 : index
    %c0_17 = arith.constant 0 : index
    %c0_18 = arith.constant 0 : index
    %34 = vector.load %arg6[%c0_16, %c0_17, %c0_18] : memref<1x1x128xi32, #tpu.memory_space<vmem>>, vector<1x1x128xi32>
    tpu.vector_store %arg6[%c0_16, %c0_17, %c0_18], %33 {strides = array<i32>} : memref<1x1x128xi32, #tpu.memory_space<vmem>>, vector<1x1x128xi32>,
    return
  }
  func.func @transform_0(%arg0: i32) -> (i32, i32) {
    %c0_i32 = arith.constant 0 : i32
    %c0_i32_0 = arith.constant 0 : i32
    return %c0_i32, %arg0 : i32, i32
  }
  func.func @transform_1(%arg0: i32) -> (i32, i32) {
    %c0_i32 = arith.constant 0 : i32
    %c0_i32_0 = arith.constant 0 : i32
    %c0_i32_1 = arith.constant 0 : i32
    return %c0_i32, %c0_i32_0 : i32, i32
  }
  func.func @transform_2(%arg0: i32) -> (i32, i32) {
    %c0_i32 = arith.constant 0 : i32
    %c0_i32_0 = arith.constant 0 : i32
    %c0_i32_1 = arith.constant 0 : i32
    return %c0_i32, %c0_i32_0 : i32, i32
  }
  func.func @transform_3(%arg0: i32) -> (i32, i32) {
    %c0_i32 = arith.constant 0 : i32
    %c0_i32_0 = arith.constant 0 : i32
    %c0_i32_1 = arith.constant 0 : i32
    return %c0_i32, %c0_i32_0 : i32, i32
  }
  func.func @transform_4(%arg0: i32) -> (i32, i32) {
    %c0_i32 = arith.constant 0 : i32
    %c0_i32_0 = arith.constant 0 : i32
    %c0_i32_1 = arith.constant 0 : i32
    return %c0_i32, %c0_i32_0 : i32, i32
  }
  func.func @transform_5(%arg0: i32) -> (i32, i32, i32) {
    %c0_i32 = arith.constant 0 : i32
    %c0_i32_0 = arith.constant 0 : i32
    %c0_i32_1 = arith.constant 0 : i32
    return %arg0, %c0_i32, %c0_i32_0 : i32, i32, i32
  }
}

</mosaic_0001>

<bundles_post_ra>
// kernel: vqvae_projector.1
= control target key start
LH: loop header
LB: loop body
LE: loop exit
PB: predicated region body
PF: predicated region fallthrough
CT: control target
= control target key end

     0   :  { %v620_v2 = vmov 0   ;;  %vm82_vm0 = vcmask 392192   ;;  %vm332_vm1 = vcmask 523264   ;;  %s979_s0 = inlined_call_operand.vmem [shape: f32[48,128], index: 0, kind: input, shape index: {}]   ;;  %s980_s2 = inlined_call_operand.vmem [shape: f32[64,1], index: 2, kind: input, shape index: {}]   ;;  %s981_s1 = inlined_call_operand.vmem [shape: f32[64,48], index: 1, kind: input, shape index: {}]   ;;  %s982_s4 = inlined_call_operand.vmem [shape: f32[128,1], index: 4, kind: input, shape index: {}]   ;;  %s983_s3 = inlined_call_operand.vmem [shape: f32[128,64], index: 3, kind: input, shape index: {}]   ;;  %s984_s5 = inlined_call_operand.vmem [shape: s32[1,1,128], index: 5, kind: output, shape index: {}]  }
   0x1   :  { %v25_v0 = vld [vmem:[%s979_s0 + $0x28] sm:$0xff]  ;;  %v24_v1 = vld [vmem:[%s979_s0 + $0x20] sm:$0xff]  ;;  %602 = vset.pattern.permute.xlu1 %v620_v2  ;;  %601 = vset.pattern.permute.xlu0 %v620_v2  ;;  %v23_v4 = vld [vmem:[%s979_s0 + $0x18] sm:$0xff] }
   0x2   :  { %117 = vmatpush.msra.mxu0 %v25_v0  ;;  %v39_v3 = vld [vmem:[%s980_s2 + $0x28] sm:$0xff]  ;;  %603 = vset.pattern.permute.xlu2 %v620_v2  ;;  %v41_v5 = vld [vmem:[%s980_s2 + $0x38] sm:$0xff]  ;;  %v22_v6 = vld [vmem:[%s979_s0 + $0x10] sm:$0xff] }
   0x3   :  { %69 = vperm.xlu1 %602, %v39_v3   ;;  %79 = vperm.xlu0 %601, %v41_v5   ;;  %v21_v7 = vld [vmem:[%s979_s0 + $0x8] sm:$0xff]  ;;  %v38_v8 = vld [vmem:[%s980_s2 + $0x20] sm:$0xff]  ;;  %v40_v10 = vld [vmem:[%s980_s2 + $0x30] sm:$0xff] }
   0x4   :  { %118 = vmatpush.msra.mxu0 %v24_v1  ;;  %v20_v9 = vld [vmem:[%s979_s0] sm:$0xff]  ;;  %v37_v12 = vld [vmem:[%s980_s2 + $0x18] sm:$0xff]  ;;  %v35_v14 = vld [vmem:[%s980_s2 + $0x8] sm:$0xff] }
   0x5   :  { %v26_v11 = vld [vmem:[%s981_s1] sm:$0xff]  ;;  %59 = vperm.xlu2 %603, %v37_v12   ;;  %v27_v15 = vld [vmem:[%s981_s1 + $0x8] sm:$0xff]  ;;  %v36_v16 = vld [vmem:[%s980_s2 + $0x10] sm:$0xff] }
   0x6   :  { %119 = vmatpush.msra.mxu0 %v23_v4  ;;  %v34_v13 = vld [vmem:[%s980_s2] sm:$0xff]  ;;  %v238_v17 = vld [vmem:[%s982_s4 + $0x10] sm:$0xff]  ;;  %v237_v18 = vld [vmem:[%s982_s4 + $0x8] sm:$0xff] }
   0x7   :  { %v28_v19 = vld [vmem:[%s981_s1 + $0x10] sm:$0xff]  ;;  %v236_v20 = vld [vmem:[%s982_s4] sm:$0xff]  ;;  %v241_v21 = vld [vmem:[%s982_s4 + $0x28] sm:$0xff] }
   0x8   :  { %120 = vmatpush.msra.mxu0 %v22_v6  ;;  %v240_v22 = vld [vmem:[%s982_s4 + $0x20] sm:$0xff]  ;;  %v29_v23 = vld [vmem:[%s981_s1 + $0x18] sm:$0xff]  ;;  %v242_v28 = vld [vmem:[%s982_s4 + $0x30] sm:$0xff] }
   0x9   :  { %v239_v24 = vld [vmem:[%s982_s4 + $0x18] sm:$0xff]  ;;  %v244_v25 = vld [vmem:[%s982_s4 + $0x40] sm:$0xff]  ;;  %v246_v30 = vld [vmem:[%s982_s4 + $0x50] sm:$0xff] }
   0xa   :  { %121 = vmatpush.msra.mxu0 %v21_v7  ;;  %v243_v26 = vld [vmem:[%s982_s4 + $0x38] sm:$0xff]  ;;  %v30_v27 = vld [vmem:[%s981_s1 + $0x20] sm:$0xff]  ;;  %v31_v31 = vld [vmem:[%s981_s1 + $0x28] sm:$0xff] }
   0xb   :  { %64 = vperm.xlu1 %602, %v38_v8   ;;  %74 = vperm.xlu0 %601, %v40_v10   ;;  %v247_v29 = vld [vmem:[%s982_s4 + $0x58] sm:$0xff]  ;;  %v245_v32 = vld [vmem:[%s982_s4 + $0x48] sm:$0xff]  ;;  %v250_v33 = vld [vmem:[%s982_s4 + $0x70] sm:$0xff] }
   0xc   :  { %122 = vmatpush.msra.mxu0 %v20_v9  ;;  %v249_v34 = vld [vmem:[%s982_s4 + $0x68] sm:$0xff]  ;;  %v32_v35 = vld [vmem:[%s981_s1 + $0x30] sm:$0xff]  ;;  %v248_v36 = vld [vmem:[%s982_s4 + $0x60] sm:$0xff] }
   0xd   :  { %560 = vmatmul.msk.f32.vlgmr.msra.gmra.mxu0 %vm82_vm0, %v26_v11  ;;  %54 = vperm.xlu2 %603, %v36_v16   ;;  %v33_v37 = vld [vmem:[%s981_s1 + $0x38] sm:$0xff] }
   0xe   :  { %v251_v38 = vld [vmem:[%s982_s4 + $0x78] sm:$0xff] }
  0x13   :  { %44 = vperm.xlu1 %602, %v34_v13   ;;  %49 = vperm.xlu0 %601, %v35_v14  }
  0x15   :  { %561 = vmatmul.msk.f32.gmra.mxu0 %vm82_vm0, %v27_v15  ;;  %254 = vperm.xlu2 %603, %v236_v20  }
  0x1b   :  { %264 = vperm.xlu1 %602, %v238_v17   ;;  %259 = vperm.xlu0 %601, %v237_v18  }
  0x1d   :  { %562 = vmatmul.msk.f32.gmra.mxu0 %vm82_vm0, %v28_v19  ;;  %269 = vperm.xlu2 %603, %v239_v24  }
  0x23   :  { %279 = vperm.xlu1 %602, %v241_v21   ;;  %274 = vperm.xlu0 %601, %v240_v22  }
  0x25   :  { %563 = vmatmul.msk.f32.gmra.mxu0 %vm82_vm0, %v29_v23  ;;  %284 = vperm.xlu2 %603, %v242_v28  }
  0x2b   :  { %294 = vperm.xlu1 %602, %v244_v25   ;;  %289 = vperm.xlu0 %601, %v243_v26  }
  0x2d   :  { %564 = vmatmul.msk.f32.gmra.mxu0 %vm82_vm0, %v30_v27  ;;  %299 = vperm.xlu2 %603, %v245_v32  }
  0x33   :  { %309 = vperm.xlu1 %602, %v247_v29   ;;  %304 = vperm.xlu0 %601, %v246_v30  }
  0x35   :  { %565 = vmatmul.msk.f32.gmra.mxu0 %vm82_vm0, %v31_v31  ;;  %314 = vperm.xlu2 %603, %v248_v36  }
  0x3b   :  { %324 = vperm.xlu1 %602, %v250_v33   ;;  %319 = vperm.xlu0 %601, %v249_v34  }
  0x3d   :  { %566 = vmatmul.msk.f32.gmra.mxu0 %vm82_vm0, %v32_v35  ;;  %329 = vperm.xlu2 %603, %v251_v38  }
  0x45   :  { %567 = vmatmul.msk.f32.gmra.mxu0 %vm82_vm0, %v33_v37 }
  0x5f   :  { %v60_v46 = vpop.permute.xlu2 %59 }
  0x67   :  { %v55_v52 = vpop.permute.xlu2 %54 }
  0x75   :  { %v80_v43 = vpop.permute.xlu0 %79  ;;  %v70_v44 = vpop.permute.xlu1 %69 }
  0x7d   :  { %v75_v47 = vpop.permute.xlu0 %74  ;;  %v65_v48 = vpop.permute.xlu1 %64 }
  0x85   :  { %v50_v55 = vpop.permute.xlu0 %49  ;;  %v45_v60 = vpop.permute.xlu1 %44 }
  0x8a   :  { %v124_v39 = vpop.f32.mrf.mxu0 }
  0x8b   :  { %v795_v2 = vadd.f32 %v124_v39, %v45_v60 }
  0x8d   :  { %v148_v11 = vmul.f32 %v795_v2, %v795_v2 }
  0x8f   :  { %v156_v20 = vmul.f32 %v148_v11, %v795_v2  ;;  %v232_v11 = vld [vmem:[%s983_s3 + $0x60] sm:$0xff] }
  0x91   :  { %v164_v29 = vmul.f32 0.044715, %v156_v20  ;;  %v230_v20 = vld [vmem:[%s983_s3 + $0x50] sm:$0xff] }
  0x92   :  { %v127_v40 = vpop.f32.mrf.mxu0 }
  0x93   :  { %v787_v61 = vadd.f32 %v127_v40, %v50_v55  ;;  %v172_v35 = vadd.f32 %v164_v29, %v795_v2  ;;  %v265_v29 = vpop.permute.xlu1 %264 }
  0x95   :  { %v149_v5 = vmul.f32 %v787_v61, %v787_v61  ;;  %v180_v40 = vmul.f32 0.7978846, %v172_v35 }
  0x97   :  { %v157_v15 = vmul.f32 %v149_v5, %v787_v61 }
  0x99   :  { %v165_v24 = vmul.f32 0.044715, %v157_v15  ;;  %v234_v15 = vld [vmem:[%s983_s3 + $0x70] sm:$0xff] }
  0x9a   :  { %v130_v41 = vpop.f32.mrf.mxu0 }
  0x9b   :  { %v783_v58 = vadd.f32 %v130_v41, %v55_v52  ;;  %v173_v32 = vadd.f32 %v165_v24, %v787_v61  ;;  %v280_v35 = vpop.permute.xlu1 %279 }
  0x9d   :  { %v150_v3 = vmul.f32 %v783_v58, %v783_v58  ;;  %v181_v38 = vmul.f32 0.7978846, %v173_v32 }
  0x9f   :  { %v158_v12 = vmul.f32 %v150_v3, %v783_v58 }
  0xa1   :  { %v166_v21 = vmul.f32 0.044715, %v158_v12  ;;  %v233_v12 = vld [vmem:[%s983_s3 + $0x68] sm:$0xff] }
  0xa2   :  { %v133_v42 = vpop.f32.mrf.mxu0 }
  0xa3   :  { %v777_v53 = vadd.f32 %v133_v42, %v60_v46  ;;  %v174_v30 = vadd.f32 %v166_v21, %v783_v58  ;;  %v225_v21 = vld [vmem:[%s983_s3 + $0x28] sm:$0xff] }
  0xa5   :  { %v151_v62 = vmul.f32 %v777_v53, %v777_v53  ;;  %v182_v36 = vmul.f32 0.7978846, %v174_v30 }
  0xa7   :  { %v159_v6 = vmul.f32 %v151_v62, %v777_v53 }
  0xa9   :  { %v167_v16 = vmul.f32 0.044715, %v159_v6 }
  0xaa   :  { %v136_v45 = vpop.f32.mrf.mxu0 }
  0xab   :  { %v775_v51 = vadd.f32 %v136_v45, %v65_v48  ;;  %v175_v25 = vadd.f32 %v167_v16, %v777_v53  ;;  %v223_v16 = vld [vmem:[%s983_s3 + $0x18] sm:$0xff] }
  0xad   :  { %v152_v56 = vmul.f32 %v775_v51, %v775_v51  ;;  %v183_v34 = vmul.f32 0.7978846, %v175_v25  ;;  %v260_v25 = vpop.permute.xlu0 %259 }
  0xaf   :  { %v160_v1 = vmul.f32 %v152_v56, %v775_v51 }
  0xb1   :  { %v168_v9 = vmul.f32 0.044715, %v160_v1 }
  0xb2   :  { %v139_v49 = vpop.f32.mrf.mxu0 }
  0xb3   :  { %v773_v50 = vadd.f32 %v139_v49, %v70_v44  ;;  %v176_v19 = vadd.f32 %v168_v9, %v775_v51 }
  0xb5   :  { %v153_v54 = vmul.f32 %v773_v50, %v773_v50  ;;  %v184_v28 = vmul.f32 0.7978846, %v176_v19  ;;  %v224_v19 = vld [vmem:[%s983_s3 + $0x20] sm:$0xff] }
  0xb7   :  { %v161_v63 = vmul.f32 %v153_v54, %v773_v50 }
  0xb9   :  { %v169_v7 = vmul.f32 0.044715, %v161_v63 }
  0xba   :  { %v142_v57 = vpop.f32.mrf.mxu0 }
  0xbb   :  { %v785_v59 = vadd.f32 %v142_v57, %v75_v47  ;;  %v177_v17 = vadd.f32 %v169_v7, %v773_v50 }
  0xbd   :  { %v154_v0 = vmul.f32 %v785_v59, %v785_v59  ;;  %v185_v27 = vmul.f32 0.7978846, %v177_v17  ;;  %v229_v17 = vld [vmem:[%s983_s3 + $0x48] sm:$0xff] }
  0xbf   :  { %v162_v4 = vmul.f32 %v154_v0, %v785_v59 }
  0xc1   :  { %v170_v8 = vmul.f32 0.044715, %v162_v4 }
  0xc2   :  { %v145_v10 = vpop.f32.mrf.mxu0 }
  0xc3   :  { %v178_v13 = vadd.f32 %v170_v8, %v785_v59  ;;  %v146_v14 = vadd.f32 %v145_v10, %v80_v43 }
  0xc5   :  { %v155_v18 = vmul.f32 %v146_v14, %v146_v14  ;;  %v186_v23 = vmul.f32 0.7978846, %v178_v13  ;;  %v222_v13 = vld [vmem:[%s983_s3 + $0x10] sm:$0xff] }
  0xc7   :  { %v163_v22 = vmul.f32 %v155_v18, %v146_v14  ;;  %604 = vtanh.f32 %v186_v23  ;;  %v235_v18 = vld [vmem:[%s983_s3 + $0x78] sm:$0xff]  ;;  %v255_v23 = vpop.permute.xlu2 %254 }
  0xc8   :  { %606 = vtanh.f32 %v185_v27 }
  0xc9   :  { %v171_v26 = vmul.f32 0.044715, %v163_v22  ;;  %608 = vtanh.f32 %v184_v28  ;;  %v231_v22 = vld [vmem:[%s983_s3 + $0x58] sm:$0xff] }
  0xcb   :  { %v179_v31 = vadd.f32 %v171_v26, %v146_v14 }
  0xcd   :  { %v187_v33 = vmul.f32 0.7978846, %v179_v31  ;;  %v605_v37 = vpop.eup %604  ;;  %v275_v31 = vpop.permute.xlu0 %274 }
  0xce   :  { %v607_v39 = vpop.eup %606  ;;  %v202_v42 = vadd.f32 1.0, %v605_v37 }
  0xcf   :  { %610 = vtanh.f32 %v187_v33  ;;  %v609_v41 = vpop.eup %608  ;;  %v201_v45 = vadd.f32 1.0, %v607_v39  ;;  %v270_v27 = vpop.permute.xlu2 %269 }
  0xd0   :  { %612 = vtanh.f32 %v183_v34  ;;  %v210_v48 = vmul.f32 0.5, %v202_v42  ;;  %v200_v49 = vadd.f32 1.0, %v609_v41  ;;  %v295_v41 = vpop.permute.xlu1 %294 }
  0xd1   :  { %614 = vtanh.f32 %v182_v36  ;;  %v209_v55 = vmul.f32 0.5, %v201_v45 }
  0xd2   :  { %616 = vtanh.f32 %v181_v38  ;;  %v218_v60 = vmul.f32 %v210_v48, %v785_v59  ;;  %v208_v62 = vmul.f32 0.5, %v200_v49 }
  0xd3   :  { %618 = vtanh.f32 %v180_v40  ;;  %v217_v1 = vmul.f32 %v209_v55, %v773_v50 }
  0xd4   :  { %v216_v5 = vmul.f32 %v208_v62, %v775_v51 }
  0xd5   :  { %v611_v43 = vpop.eup %610  ;;  %v290_v38 = vpop.permute.xlu0 %289 }
  0xd6   :  { %v203_v44 = vadd.f32 1.0, %v611_v43  ;;  %v613_v46 = vpop.eup %612 }
  0xd7   :  { %v615_v52 = vpop.eup %614  ;;  %v199_v56 = vadd.f32 1.0, %v613_v46  ;;  %v285_v34 = vpop.permute.xlu2 %284 }
  0xd8   :  { %v211_v47 = vmul.f32 0.5, %v203_v44  ;;  %v617_v57 = vpop.eup %616  ;;  %v198_v63 = vadd.f32 1.0, %v615_v52 }
  0xd9   :  { %v619_v0 = vpop.eup %618  ;;  %v207_v3 = vmul.f32 0.5, %v199_v56  ;;  %v197_v4 = vadd.f32 1.0, %v617_v57 }
  0xda   :  { %v219_v54 = vmul.f32 %v211_v47, %v146_v14  ;;  %v206_v6 = vmul.f32 0.5, %v198_v63  ;;  %v196_v7 = vadd.f32 1.0, %v619_v0  ;;  %v228_v14 = vld [vmem:[%s983_s3 + $0x40] sm:$0xff]  ;;  %v310_v47 = vpop.permute.xlu1 %309 }
  0xdb   :  { %v215_v59 = vmul.f32 %v207_v3, %v777_v53  ;;  %v205_v8 = vmul.f32 0.5, %v197_v4  ;;  %v220_v53 = vld [vmem:[%s983_s3] sm:$0xff] }
  0xdc   :  { %389 = vmatpush.msra.mxu1 %v219_v54  ;;  %584 = vmatpush.msra.mxu2 %v219_v54  ;;  %v214_v50 = vmul.f32 %v206_v6, %v783_v58  ;;  %v204_v9 = vmul.f32 0.5, %v196_v7  ;;  %v226_v58 = vld [vmem:[%s983_s3 + $0x30] sm:$0xff] }
  0xdd   :  { %585 = vmatpush.msra.mxu3 %v219_v54  ;;  %v213_v10 = vmul.f32 %v205_v8, %v787_v61  ;;  %v221_v61 = vld [vmem:[%s983_s3 + $0x8] sm:$0xff]  ;;  %v305_v44 = vpop.permute.xlu0 %304 }
  0xde   :  { %390 = vmatpush.msra.mxu1 %v218_v60  ;;  %586 = vmatpush.msra.mxu2 %v218_v60  ;;  %v212_v51 = vmul.f32 %v204_v9, %v795_v2  ;;  %v227_v2 = vld [vmem:[%s983_s3 + $0x38] sm:$0xff] }
  0xdf   :  { %587 = vmatpush.msra.mxu3 %v218_v60  ;;  %v300_v40 = vpop.permute.xlu2 %299 }
  0xe0   :  { %391 = vmatpush.msra.mxu1 %v217_v1  ;;  %588 = vmatpush.msra.mxu2 %v217_v1 }
  0xe1   :  { %589 = vmatpush.msra.mxu3 %v217_v1 }
  0xe2   :  { %392 = vmatpush.msra.mxu1 %v216_v5  ;;  %590 = vmatpush.msra.mxu2 %v216_v5 }
  0xe3   :  { %591 = vmatpush.msra.mxu3 %v216_v5 }
  0xe4   :  { %393 = vmatpush.msra.mxu1 %v215_v59  ;;  %592 = vmatpush.msra.mxu2 %v215_v59 }
  0xe5   :  { %593 = vmatpush.msra.mxu3 %v215_v59  ;;  %v320_v4 = vpop.permute.xlu0 %319 }
  0xe6   :  { %394 = vmatpush.msra.mxu1 %v214_v50  ;;  %594 = vmatpush.msra.mxu2 %v214_v50 }
  0xe7   :  { %595 = vmatpush.msra.mxu3 %v214_v50  ;;  %v315_v46 = vpop.permute.xlu2 %314 }
  0xe8   :  { %395 = vmatpush.msra.mxu1 %v213_v10  ;;  %596 = vmatpush.msra.mxu2 %v213_v10 }
  0xe9   :  { %597 = vmatpush.msra.mxu3 %v213_v10 }
  0xea   :  { %396 = vmatpush.msra.mxu1 %v212_v51  ;;  %598 = vmatpush.msra.mxu2 %v212_v51 }
  0xeb   :  { %599 = vmatpush.msra.mxu3 %v212_v51  ;;  %568 = vmatmul.msk.f32.vlgmr.msra.gmra.mxu1 %vm332_vm1, %v220_v53 }
  0xec   :  { %574 = vmatmul.msk.f32.vlgmr.msra.gmra.mxu2 %vm332_vm1, %v226_v58  ;;  %580 = vmatmul.msk.f32.vlgmr.msra.gmra.mxu3 %vm332_vm1, %v232_v11  ;;  %v325_v11 = vpop.permute.xlu1 %324 }
  0xf3   :  { %569 = vmatmul.msk.f32.gmra.mxu1 %vm332_vm1, %v221_v61  ;;  %v330_v61 = vpop.permute.xlu2 %329 }
  0xf4   :  { %575 = vmatmul.msk.f32.gmra.mxu2 %vm332_vm1, %v227_v2  ;;  %581 = vmatmul.msk.f32.gmra.mxu3 %vm332_vm1, %v233_v12 }
  0xfb   :  { %570 = vmatmul.msk.f32.gmra.mxu1 %vm332_vm1, %v222_v13 }
  0xfc   :  { %576 = vmatmul.msk.f32.gmra.mxu2 %vm332_vm1, %v228_v14  ;;  %582 = vmatmul.msk.f32.gmra.mxu3 %vm332_vm1, %v234_v15 }
 0x103   :  { %571 = vmatmul.msk.f32.gmra.mxu1 %vm332_vm1, %v223_v16 }
 0x104   :  { %577 = vmatmul.msk.f32.gmra.mxu2 %vm332_vm1, %v229_v17  ;;  %583 = vmatmul.msk.f32.gmra.mxu3 %vm332_vm1, %v235_v18 }
 0x10b   :  { %572 = vmatmul.msk.f32.gmra.mxu1 %vm332_vm1, %v224_v19 }
 0x10c   :  { %578 = vmatmul.msk.f32.gmra.mxu2 %vm332_vm1, %v230_v20 }
 0x113   :  { %573 = vmatmul.msk.f32.gmra.mxu1 %vm332_vm1, %v225_v21 }
 0x114   :  { %579 = vmatmul.msk.f32.gmra.mxu2 %vm332_vm1, %v231_v22 }
 0x168   :  { %v398_v24 = vpop.f32.mrf.mxu1 }
 0x169   :  { %v892_v56 = vadd.f32 %v398_v24, %v255_v23  ;;  %v467_v23 = vlaneseq }
 0x16f   :  { %v416_v26 = vpop.f32.mrf.mxu2  ;;  %v434_v33 = vpop.f32.mrf.mxu3 }
 0x170   :  { %v401_v28 = vpop.f32.mrf.mxu1  ;;  %v896_v60 = vadd.f32 %v416_v26, %v285_v34  ;;  %v923_v2 = vadd.f32 %v434_v33, %v315_v46  ;;  %v468_v26 = vshrl.u32 %v467_v23, 7 }
 0x171   :  { %v888_v54 = vadd.f32 %v401_v28, %v260_v25 }
 0x172   :  { %v473_v33 = vadd.s32 40, %v468_v26  ;;  %v474_v34 = vadd.s32 48, %v468_v26 }
 0x177   :  { %v419_v30 = vpop.f32.mrf.mxu2  ;;  %v437_v39 = vpop.f32.mrf.mxu3 }
 0x178   :  { %v404_v32 = vpop.f32.mrf.mxu1  ;;  %v908_v5 = vadd.f32 %v419_v30, %v290_v38  ;;  %v915_v8 = vadd.f32 %v437_v39, %v320_v4  ;;  %v470_v30 = vadd.s32 16, %v468_v26  ;;  %v477_v38 = vadd.s32 72, %v468_v26 }
 0x179   :  { %v894_v57 = vadd.f32 %v404_v32, %v265_v29  ;;  %v469_v29 = vadd.s32 8, %v468_v26  ;;  %v472_v32 = vadd.s32 32, %v468_v26  ;;  %v478_v39 = vadd.s32 80, %v468_v26 }
 0x17b   :  { %v448_v6 = vmin.f32 %v894_v57, %v896_v60 }
 0x17f   :  { %v422_v36 = vpop.f32.mrf.mxu2  ;;  %v440_v45 = vpop.f32.mrf.mxu3 }
 0x180   :  { %v407_v37 = vpop.f32.mrf.mxu1  ;;  %v912_v7 = vadd.f32 %v422_v36, %v295_v41  ;;  %v925_v12 = vadd.f32 %v440_v45, %v325_v11  ;;  %v475_v36 = vadd.s32 56, %v468_v26  ;;  %v480_v41 = vadd.s32 96, %v468_v26 }
 0x181   :  { %v900_v63 = vadd.f32 %v407_v37, %v270_v27  ;;  %v476_v37 = vadd.s32 64, %v468_v26 }
 0x183   :  { %v449_v10 = vmin.f32 %v900_v63, %v908_v5 }
 0x187   :  { %v425_v42 = vpop.f32.mrf.mxu2  ;;  %v443_v50 = vpop.f32.mrf.mxu3 }
 0x188   :  { %v410_v43 = vpop.f32.mrf.mxu1  ;;  %v902_v0 = vadd.f32 %v425_v42, %v300_v40  ;;  %v927_v13 = vadd.f32 %v443_v50, %v330_v61  ;;  %v479_v40 = vadd.s32 88, %v468_v26  ;;  %v481_v42 = vadd.s32 104, %v468_v26 }
 0x189   :  { %v886_v49 = vadd.f32 %v410_v43, %v275_v31  ;;  %v471_v31 = vadd.s32 24, %v468_v26  ;;  %v482_v43 = vadd.s32 112, %v468_v26 }
 0x18b   :  { %v446_v1 = vmin.f32 %v892_v56, %v886_v49 }
 0x18d   :  { %v450_v51 = vmin.f32 %v446_v1, %v912_v7 }
 0x18f   :  { %v428_v48 = vpop.f32.mrf.mxu2  ;;  %v454_v16 = vmin.f32 %v450_v51, %v923_v2 }
 0x190   :  { %v413_v52 = vpop.f32.mrf.mxu1  ;;  %v906_v3 = vadd.f32 %v428_v48, %v305_v44  ;;  %v483_v44 = vadd.s32 120, %v468_v26 }
 0x191   :  { %v890_v55 = vadd.f32 %v413_v52, %v280_v35 }
 0x192   :  { %v452_v53 = vmin.f32 %v448_v6, %v906_v3 }
 0x193   :  { %v447_v62 = vmin.f32 %v888_v54, %v890_v55 }
 0x194   :  { %v456_v17 = vmin.f32 %v452_v53, %v925_v12 }
 0x195   :  { %v451_v59 = vmin.f32 %v447_v62, %v902_v0 }
 0x197   :  { %v431_v9 = vpop.f32.mrf.mxu2  ;;  %v455_v14 = vmin.f32 %v451_v59, %v915_v8 }
 0x198   :  { %v921_v58 = vadd.f32 %v431_v9, %v310_v47 }
 0x199   :  { %v458_v19 = vmin.f32 %v454_v16, %v455_v14 }
 0x19a   :  { %v453_v15 = vmin.f32 %v449_v10, %v921_v58 }
 0x19c   :  { %v457_v18 = vmin.f32 %v453_v15, %v927_v13 }
 0x19e   :  { %v459_v20 = vmin.f32 %v456_v17, %v457_v18 }
 0x1a0   :  { %v460_v21 = vmin.f32 %v458_v19, %v459_v20 }
 0x1a2   :  { %v461_v22 = vrot.slane %v460_v21, 4 }
 0x1a4   :  { %v462_v24 = vmin.f32 %v460_v21, %v461_v22 }
 0x1a6   :  { %v463_v25 = vrot.slane %v462_v24, 2 }
 0x1a8   :  { %v464_v27 = vmin.f32 %v462_v24, %v463_v25 }
 0x1aa   :  { %v465_v28 = vrot.slane %v464_v27, 1 }
 0x1ac   :  { %v466_v35 = vmin.f32 %v464_v27, %v465_v28 }
 0x1ae   :  { %vm484_vm2 = vcmp.le.f32.partialorder %v892_v56, %v466_v35  ;;  %vm485_vm3 = vcmp.le.f32.partialorder %v888_v54, %v466_v35  ;;  %vm486_vm4 = vcmp.le.f32.partialorder %v894_v57, %v466_v35  ;;  %vm487_vm5 = vcmp.le.f32.partialorder %v900_v63, %v466_v35 }
 0x1af   :  { %vm488_vm6 = vcmp.le.f32.partialorder %v886_v49, %v466_v35  ;;  %vm489_vm7 = vcmp.le.f32.partialorder %v890_v55, %v466_v35  ;;  %vm490_vm8 = vcmp.le.f32.partialorder %v896_v60, %v466_v35  ;;  %vm491_vm9 = vcmp.le.f32.partialorder %v908_v5, %v466_v35 }
 0x1b0   :  { %vm492_vm10 = vcmp.le.f32.partialorder %v912_v7, %v466_v35  ;;  %vm493_vm11 = vcmp.le.f32.partialorder %v902_v0, %v466_v35  ;;  %vm494_vm12 = vcmp.le.f32.partialorder %v906_v3, %v466_v35  ;;  %vm495_vm13 = vcmp.le.f32.partialorder %v921_v58, %v466_v35 }
 0x1b1   :  { %vm496_vm14 = vcmp.le.f32.partialorder %v923_v2, %v466_v35  ;;  %vm497_vm15 = vcmp.le.f32.partialorder %v915_v8, %v466_v35  ;;  %vm498_vm0 = vcmp.le.f32.partialorder %v925_v12, %v466_v35  ;;  %v500_v45 = vsel %vm484_vm2, %v468_v26, 2147483647 }
 0x1b2   :  { %v501_v46 = vsel %vm485_vm3, %v469_v29, 2147483647  ;;  %v502_v47 = vsel %vm486_vm4, %v470_v30, 2147483647  ;;  %vm499_vm1 = vcmp.le.f32.partialorder %v927_v13, %v466_v35  ;;  %v503_v48 = vsel %vm487_vm5, %v471_v31, 2147483647 }
 0x1b3   :  { %v504_v52 = vsel %vm488_vm6, %v472_v32, 2147483647  ;;  %v505_v54 = vsel %vm489_vm7, %v473_v33, 2147483647  ;;  %v506_v56 = vsel %vm490_vm8, %v474_v34, 2147483647 }
 0x1b4   :  { %v507_v57 = vsel %vm491_vm9, %v475_v36, 2147483647  ;;  %v508_v62 = vsel %vm492_vm10, %v476_v37, 2147483647  ;;  %vm516_vm2 = vcmp.lt.s32.totalorder %v500_v45, %v504_v52  ;;  %v509_v63 = vsel %vm493_vm11, %v477_v38, 2147483647 }
 0x1b5   :  { %v510_v49 = vsel %vm494_vm12, %v478_v39, 2147483647  ;;  %v511_v55 = vsel %vm495_vm13, %v479_v40, 2147483647  ;;  %v517_v1 = vsel %vm516_vm2, %v500_v45, %v504_v52  ;;  %v512_v60 = vsel %vm496_vm14, %v480_v41, 2147483647 }
 0x1b6   :  { %v513_v4 = vsel %vm497_vm15, %v481_v42, 2147483647  ;;  %v514_v5 = vsel %vm498_vm0, %v482_v43, 2147483647  ;;  %vm518_vm3 = vcmp.lt.s32.totalorder %v501_v46, %v505_v54  ;;  %v515_v0 = vsel %vm499_vm1, %v483_v44, 2147483647 }
 0x1b7   :  { %v519_v6 = vsel %vm518_vm3, %v501_v46, %v505_v54  ;;  %vm520_vm4 = vcmp.lt.s32.totalorder %v502_v47, %v506_v56  ;;  %vm522_vm5 = vcmp.lt.s32.totalorder %v503_v48, %v507_v57  ;;  %vm524_vm6 = vcmp.lt.s32.totalorder %v517_v1, %v508_v62 }
 0x1b8   :  { %v521_v3 = vsel %vm520_vm4, %v502_v47, %v506_v56  ;;  %v523_v7 = vsel %vm522_vm5, %v503_v48, %v507_v57  ;;  %vm526_vm7 = vcmp.lt.s32.totalorder %v519_v6, %v509_v63  ;;  %v525_v59 = vsel %vm524_vm6, %v517_v1, %v508_v62 }
 0x1b9   :  { %v527_v50 = vsel %vm526_vm7, %v519_v6, %v509_v63  ;;  %vm528_vm8 = vcmp.lt.s32.totalorder %v521_v3, %v510_v49  ;;  %vm530_vm9 = vcmp.lt.s32.totalorder %v523_v7, %v511_v55  ;;  %vm532_vm10 = vcmp.lt.s32.totalorder %v525_v59, %v512_v60 }
 0x1ba   :  { %v529_v8 = vsel %vm528_vm8, %v521_v3, %v510_v49  ;;  %v531_v9 = vsel %vm530_vm9, %v523_v7, %v511_v55  ;;  %vm534_vm11 = vcmp.lt.s32.totalorder %v527_v50, %v513_v4  ;;  %v533_v10 = vsel %vm532_vm10, %v525_v59, %v512_v60 }
 0x1bb   :  { %v535_v51 = vsel %vm534_vm11, %v527_v50, %v513_v4  ;;  %vm536_vm12 = vcmp.lt.s32.totalorder %v529_v8, %v514_v5  ;;  %vm538_vm13 = vcmp.lt.s32.totalorder %v531_v9, %v515_v0 }
 0x1bc   :  { %v537_v53 = vsel %vm536_vm12, %v529_v8, %v514_v5  ;;  %v539_v58 = vsel %vm538_vm13, %v531_v9, %v515_v0  ;;  %vm540_vm14 = vcmp.lt.s32.totalorder %v533_v10, %v535_v51 }
 0x1bd   :  { %v541_v11 = vsel %vm540_vm14, %v533_v10, %v535_v51  ;;  %vm542_vm15 = vcmp.lt.s32.totalorder %v537_v53, %v539_v58 }
 0x1be   :  { %v543_v61 = vsel %vm542_vm15, %v537_v53, %v539_v58 }
 0x1bf   :  { %vm544_vm0 = vcmp.lt.s32.totalorder %v541_v11, %v543_v61 }
 0x1c0   :  { %v545_v2 = vsel %vm544_vm0, %v541_v11, %v543_v61 }
 0x1c1   :  { %v546_v12 = vrot.slane %v545_v2, 4 }
 0x1c3   :  { %vm547_vm1 = vcmp.lt.s32.totalorder %v545_v2, %v546_v12 }
 0x1c4   :  { %v548_v13 = vsel %vm547_vm1, %v545_v2, %v546_v12 }
 0x1c5   :  { %v549_v14 = vrot.slane %v548_v13, 2 }
 0x1c7   :  { %vm550_vm2 = vcmp.lt.s32.totalorder %v548_v13, %v549_v14 }
 0x1c8   :  { %v551_v15 = vsel %vm550_vm2, %v548_v13, %v549_v14 }
 0x1c9   :  { %v552_v16 = vrot.slane %v551_v15, 1 }
 0x1cb   :  { %vm553_vm3 = vcmp.lt.s32.totalorder %v551_v15, %v552_v16 }
 0x1cc   :  { %v554_v17 = vsel %vm553_vm3, %v551_v15, %v552_v16 }
 0x1cd   :  { %555 = vst [vmem:[%s984_s5] sm:$0x1] %v554_v17 }

</bundles_post_ra>
